<compile_context>
chip_gen: v5e
topology: v5e:2x2
jax: 0.10.0
libtpu: 0.0.40
codegen_flags: <defaults>
</compile_context>

<pallas_src>
import math

import jax
import jax.numpy as jnp
from jax.experimental import pallas as pl
from jax.experimental.pallas import tpu as pltpu


def _round_up(x: int, m: int) -> int:
    return ((x + m - 1) // m) * m


def mlp_kernel(x_ref, w1_ref, b1_ref, w2_ref, b2_ref, w3_ref, b3_ref, o_ref):
    """Fused 3-layer MLP forward on one batch tile.

    All parameter refs are full (tiny) arrays, VMEM-resident across the grid
    (constant index_map); only x/out are batch-tiled.
    """
    x = x_ref[...].astype(jnp.float32)                      # (TB, d_in)

    # layer 1: Linear(d_in, 12) + ReLU
    h = jnp.dot(x, w1_ref[...], preferred_element_type=jnp.float32) + b1_ref[...]
    h = jnp.maximum(h, 0.0)
    # layer 2: Linear(12, 6) + ReLU
    h = jnp.dot(h, w2_ref[...], preferred_element_type=jnp.float32) + b2_ref[...]
    h = jnp.maximum(h, 0.0)
    # layer 3: Linear(6, d_out), no activation
    out = jnp.dot(h, w3_ref[...], preferred_element_type=jnp.float32) + b3_ref[...]

    o_ref[...] = out.astype(o_ref.dtype)


def linear_nn_forward(x, params, *, block_batch=12288, use_bf16_io=False):
    """Batch-tiled fused Pallas MLP forward.  x: (B, D_in)."""
    w1, b1, w2, b2, w3, b3 = params
    d_in, hid1 = w1.shape
    hid2 = w2.shape[1]
    d_out = w3.shape[1]
    batch = x.shape[0]

    # bf16 I/O halves HBM traffic (the only thing this kernel is bound by) on
    # v5e/v6e/v7x; accumulation stays f32 in-kernel.  Off by default to keep
    # the exact 1e-5 match with the f32 reference.
    io_dtype = jnp.bfloat16 if use_bf16_io else jnp.float32
    x_io = x.astype(io_dtype)

    # Batch tile: multiple of 8 (sublane).  ~512 B/row/buffer for each of the
    # x and out blocks in VMEM layout -> 2 bufs x 2 operands x tb rows
    # ~= 2 KiB * tb; tb=12288 -> ~24 MiB, within every generation's budget
    # given the explicit vmem_limit below (v7x: 64 MiB/TC physical).
    tb = min(_round_up(block_batch, 8), _round_up(batch, 8))
    grid = (pl.cdiv(batch, tb),)   # partial tail block handled by Pallas masking

    itemsize = jnp.dtype(io_dtype).itemsize
    param_bytes = 4 * (d_in * hid1 + hid1 + hid1 * hid2 + hid2
                       + hid2 * d_out + d_out)
    cost = pl.CostEstimate(
        flops=2 * batch * (d_in * hid1 + hid1 * hid2 + hid2 * d_out),
        transcendentals=0,
        bytes_accessed=batch * (d_in + d_out) * itemsize + param_bytes,
    )

    out = pl.pallas_call(
        mlp_kernel,
        out_shape=jax.ShapeDtypeStruct((batch, d_out), io_dtype),
        grid=grid,
        in_specs=[
            pl.BlockSpec((tb, d_in), lambda i: (i, 0)),        # batch-tiled x
            pl.BlockSpec((d_in, hid1), lambda i: (0, 0)),      # W1 (resident)
            pl.BlockSpec((1, hid1), lambda i: (0, 0)),         # b1
            pl.BlockSpec((hid1, hid2), lambda i: (0, 0)),      # W2
            pl.BlockSpec((1, hid2), lambda i: (0, 0)),         # b2
            pl.BlockSpec((hid2, d_out), lambda i: (0, 0)),     # W3
            pl.BlockSpec((1, d_out), lambda i: (0, 0)),        # b3
        ],
        # Unpadded, full-width-last-dim output block (== array dim -> legal).
        out_specs=pl.BlockSpec((tb, d_out), lambda i: (i, 0)),
        compiler_params=pltpu.CompilerParams(
            dimension_semantics=("parallel",),
            vmem_limit_bytes=40 * 1024 * 1024,
        ),
        cost_estimate=cost,
    )(x_io, w1, b1, w2, b2, w3, b3)

    return out


def init_params(key, input_dim, output_dim):
    """Deterministic init mirroring the PyTorch module's init scheme.

    linear_1 / linear_2 weights: kaiming_uniform_(nonlinearity='relu')
      -> U(-bound, bound), bound = sqrt(2) * sqrt(3 / fan_in)
    linear_3 weight: uniform_() -> U(0, 1)
    linear_1 / linear_2 biases: zeros
    linear_3 bias: uniform_() -> U(0, 1)
    Weights stored as (in_features, out_features) — transposed vs. torch.
    """
    k1, k2, k3, k4 = jax.random.split(key, 4)

    def kaiming_uniform(k, fan_in, fan_out):
        gain = math.sqrt(2.0)                      # relu
        bound = gain * math.sqrt(3.0 / fan_in)
        w = jax.random.uniform(k, (fan_out, fan_in), jnp.float32, -bound, bound)
        return w.T                                 # (in, out)

    hid1, hid2 = 12, 6
    w1 = kaiming_uniform(k1, input_dim, hid1)                      # (D_in, 12)
    b1 = jnp.zeros((1, hid1), jnp.float32)
    w2 = kaiming_uniform(k2, hid1, hid2)                           # (12, 6)
    b2 = jnp.zeros((1, hid2), jnp.float32)
    fan_in3 = w2.shape[1]                                          # 6
    w3 = jax.random.uniform(k3, (output_dim, fan_in3), jnp.float32, 0.0, 1.0).T
    b3 = jax.random.uniform(k4, (1, output_dim), jnp.float32, 0.0, 1.0)
    return (w1, b1, w2, b2, w3, b3)


def reference_forward(x, params):
    """Pure-JAX reference for verification."""
    w1, b1, w2, b2, w3, b3 = params
    h1 = jnp.maximum(x @ w1 + b1, 0.0)
    h2 = jnp.maximum(h1 @ w2 + b2, 0.0)
    return h2 @ w3 + b3


if __name__ == "__main__":
    key = jax.random.PRNGKey(0)
    k_param, k_x = jax.random.split(key)

    input_dim, output_dim, batch = 16, 4, 8
    params = init_params(k_param, input_dim, output_dim)
    x = jax.random.normal(k_x, (batch, input_dim), jnp.float32)

    out = jax.block_until_ready(linear_nn_forward(x, params))
    ref = reference_forward(x, params)

    assert out.shape == (batch, output_dim), out.shape
    assert jnp.allclose(out, ref, atol=1e-5, rtol=1e-5), "mismatch vs reference"

    print("KERNEL_OK")
</pallas_src>

<mosaic_0001>
module attributes {stable_mosaic.version = 11 : i64} {
  func.func @mlp_kernel(%arg0: i32, %arg1: memref<8x16xf32, #tpu.memory_space<vmem>>, %arg2: memref<16x12xf32, #tpu.memory_space<vmem>>, %arg3: memref<1x12xf32, #tpu.memory_space<vmem>>, %arg4: memref<12x6xf32, #tpu.memory_space<vmem>>, %arg5: memref<1x6xf32, #tpu.memory_space<vmem>>, %arg6: memref<6x4xf32, #tpu.memory_space<vmem>>, %arg7: memref<1x4xf32, #tpu.memory_space<vmem>>, %arg8: memref<8x4xf32, #tpu.memory_space<vmem>>) attributes {dimension_semantics = [#tpu.dimension_semantics<parallel>], iteration_bounds = array<i64: 1>, scalar_prefetch = 0 : i64, scratch_operands = 0 : i64, tpu.core_type = #tpu.core_type<tc>, window_params = [{transform_indices = @transform_0, window_bounds = array<i64: 8, 16>}, {pipeline_mode = #tpu.pipeline_mode<synchronous>, transform_indices = @transform_1, window_bounds = array<i64: 16, 12>}, {pipeline_mode = #tpu.pipeline_mode<synchronous>, transform_indices = @transform_2, window_bounds = array<i64: 1, 12>}, {pipeline_mode = #tpu.pipeline_mode<synchronous>, transform_indices = @transform_3, window_bounds = array<i64: 12, 6>}, {pipeline_mode = #tpu.pipeline_mode<synchronous>, transform_indices = @transform_4, window_bounds = array<i64: 1, 6>}, {pipeline_mode = #tpu.pipeline_mode<synchronous>, transform_indices = @transform_5, window_bounds = array<i64: 6, 4>}, {pipeline_mode = #tpu.pipeline_mode<synchronous>, transform_indices = @transform_6, window_bounds = array<i64: 1, 4>}, {transform_indices = @transform_7, window_bounds = array<i64: 8, 4>}]} {
    %c0 = arith.constant 0 : index
    %c0_0 = arith.constant 0 : index
    %0 = vector.load %arg1[%c0, %c0_0] : memref<8x16xf32, #tpu.memory_space<vmem>>, vector<8x16xf32>
    %c0_1 = arith.constant 0 : index
    %c0_2 = arith.constant 0 : index
    %1 = vector.load %arg2[%c0_1, %c0_2] : memref<16x12xf32, #tpu.memory_space<vmem>>, vector<16x12xf32>
    %cst = arith.constant dense<0.000000e+00> : vector<8x12xf32>
    %2 = tpu.matmul %0, %1, %cst {dimension_numbers = #tpu.dot_dimension_numbers<[1], [0], [0], [1], [0, 0, 1, 1], [], []>} : vector<8x16xf32>, vector<16x12xf32>, vector<8x12xf32> -> vector<8x12xf32>
    %c0_3 = arith.constant 0 : index
    %c0_4 = arith.constant 0 : index
    %3 = vector.load %arg3[%c0_3, %c0_4] : memref<1x12xf32, #tpu.memory_space<vmem>>, vector<1x12xf32>
    %4 = vector.broadcast %3 : vector<1x12xf32> to vector<8x12xf32>
    %5 = arith.addf %2, %4 : vector<8x12xf32>
    %cst_5 = arith.constant 0.000000e+00 : f32
    %6 = vector.broadcast %cst_5 : f32 to vector<8x12xf32>
    %7 = arith.maximumf %5, %6 : vector<8x12xf32>
    %c0_6 = arith.constant 0 : index
    %c0_7 = arith.constant 0 : index
    %8 = vector.load %arg4[%c0_6, %c0_7] : memref<12x6xf32, #tpu.memory_space<vmem>>, vector<12x6xf32>
    %cst_8 = arith.constant dense<0.000000e+00> : vector<8x6xf32>
    %9 = tpu.matmul %7, %8, %cst_8 {dimension_numbers = #tpu.dot_dimension_numbers<[1], [0], [0], [1], [0, 0, 1, 1], [], []>} : vector<8x12xf32>, vector<12x6xf32>, vector<8x6xf32> -> vector<8x6xf32>
    %c0_9 = arith.constant 0 : index
    %c0_10 = arith.constant 0 : index
    %10 = vector.load %arg5[%c0_9, %c0_10] : memref<1x6xf32, #tpu.memory_space<vmem>>, vector<1x6xf32>
    %11 = vector.broadcast %10 : vector<1x6xf32> to vector<8x6xf32>
    %12 = arith.addf %9, %11 : vector<8x6xf32>
    %cst_11 = arith.constant 0.000000e+00 : f32
    %13 = vector.broadcast %cst_11 : f32 to vector<8x6xf32>
    %14 = arith.maximumf %12, %13 : vector<8x6xf32>
    %c0_12 = arith.constant 0 : index
    %c0_13 = arith.constant 0 : index
    %15 = vector.load %arg6[%c0_12, %c0_13] : memref<6x4xf32, #tpu.memory_space<vmem>>, vector<6x4xf32>
    %cst_14 = arith.constant dense<0.000000e+00> : vector<8x4xf32>
    %16 = tpu.matmul %14, %15, %cst_14 {dimension_numbers = #tpu.dot_dimension_numbers<[1], [0], [0], [1], [0, 0, 1, 1], [], []>} : vector<8x6xf32>, vector<6x4xf32>, vector<8x4xf32> -> vector<8x4xf32>
    %c0_15 = arith.constant 0 : index
    %c0_16 = arith.constant 0 : index
    %17 = vector.load %arg7[%c0_15, %c0_16] : memref<1x4xf32, #tpu.memory_space<vmem>>, vector<1x4xf32>
    %18 = vector.broadcast %17 : vector<1x4xf32> to vector<8x4xf32>
    %19 = arith.addf %16, %18 : vector<8x4xf32>
    %c0_17 = arith.constant 0 : index
    %c0_18 = arith.constant 0 : index
    %20 = vector.load %arg8[%c0_17, %c0_18] : memref<8x4xf32, #tpu.memory_space<vmem>>, vector<8x4xf32>
    tpu.vector_store %arg8[%c0_17, %c0_18], %19 {strides = array<i32>} : memref<8x4xf32, #tpu.memory_space<vmem>>, vector<8x4xf32>,
    return
  }
  func.func @transform_0(%arg0: i32) -> (i32, i32) {
    %c0_i32 = arith.constant 0 : i32
    %c0_i32_0 = arith.constant 0 : i32
    return %arg0, %c0_i32 : i32, i32
  }
  func.func @transform_1(%arg0: i32) -> (i32, i32) {
    %c0_i32 = arith.constant 0 : i32
    %c0_i32_0 = arith.constant 0 : i32
    %c0_i32_1 = arith.constant 0 : i32
    return %c0_i32, %c0_i32_0 : i32, i32
  }
  func.func @transform_2(%arg0: i32) -> (i32, i32) {
    %c0_i32 = arith.constant 0 : i32
    %c0_i32_0 = arith.constant 0 : i32
    %c0_i32_1 = arith.constant 0 : i32
    return %c0_i32, %c0_i32_0 : i32, i32
  }
  func.func @transform_3(%arg0: i32) -> (i32, i32) {
    %c0_i32 = arith.constant 0 : i32
    %c0_i32_0 = arith.constant 0 : i32
    %c0_i32_1 = arith.constant 0 : i32
    return %c0_i32, %c0_i32_0 : i32, i32
  }
  func.func @transform_4(%arg0: i32) -> (i32, i32) {
    %c0_i32 = arith.constant 0 : i32
    %c0_i32_0 = arith.constant 0 : i32
    %c0_i32_1 = arith.constant 0 : i32
    return %c0_i32, %c0_i32_0 : i32, i32
  }
  func.func @transform_5(%arg0: i32) -> (i32, i32) {
    %c0_i32 = arith.constant 0 : i32
    %c0_i32_0 = arith.constant 0 : i32
    %c0_i32_1 = arith.constant 0 : i32
    return %c0_i32, %c0_i32_0 : i32, i32
  }
  func.func @transform_6(%arg0: i32) -> (i32, i32) {
    %c0_i32 = arith.constant 0 : i32
    %c0_i32_0 = arith.constant 0 : i32
    %c0_i32_1 = arith.constant 0 : i32
    return %c0_i32, %c0_i32_0 : i32, i32
  }
  func.func @transform_7(%arg0: i32) -> (i32, i32) {
    %c0_i32 = arith.constant 0 : i32
    %c0_i32_0 = arith.constant 0 : i32
    return %arg0, %c0_i32 : i32, i32
  }
}

</mosaic_0001>

<bundles_post_ra>
// kernel: tpu_custom_call.1
= control target key start
LH: loop header
LB: loop body
LE: loop exit
PB: predicated region body
PF: predicated region fallthrough
CT: control target
= control target key end

     0   :  { %vm33_vm0 = vcmask 130048   ;;  %vm68_vm1 = vcmask 1043456   ;;  %vm64_vm2 = vcmask 97280   ;;  %vm102_vm3 = vcmask 1045504   ;;  %s210_s1 = inlined_call_operand.vmem [shape: f32[16,12], index: 1, kind: input, shape index: {}]   ;;  %s211_s0 = inlined_call_operand.vmem [shape: f32[8,16], index: 0, kind: input, shape index: {}]   ;;  %s212_s2 = inlined_call_operand.vmem [shape: f32[1,12], index: 2, kind: input, shape index: {}]   ;;  %s213_s4 = inlined_call_operand.vmem [shape: f32[1,6], index: 4, kind: input, shape index: {}]   ;;  %s214_s3 = inlined_call_operand.vmem [shape: f32[12,6], index: 3, kind: input, shape index: {}]   ;;  %s215_s6 = inlined_call_operand.vmem [shape: f32[1,4], index: 6, kind: input, shape index: {}]   ;;  %s216_s5 = inlined_call_operand.vmem [shape: f32[6,4], index: 5, kind: input, shape index: {}]   ;;  %s217_s7 = inlined_call_operand.vmem [shape: f32[8,4], index: 7, kind: output, shape index: {}]  }
   0x1   :  { %v28_v0 = vld [vmem:[%s210_s1 + $0x8] sm:$0xff]  ;;  %v27_v1 = vld [vmem:[%s210_s1] sm:$0xff]  ;;  %vm98_vm4 = vcmask 48128   ;;  %vm126_vm5 = vcmask 31744  }
   0x2   :  { %51 = vmatpush.msra.mxu0 %v28_v0  ;;  %v26_v2 = vld [vmem:[%s211_s0] sm:$0xff]  ;;  %v59_v3 = vld [vmem:[%s214_s3 + $0x8] sm:$0xf] }
   0x3   :  { %133 = vmatpush.msk.msra.mxu1 %vm68_vm1, %v59_v3  ;;  %v58_v4 = vld [vmem:[%s214_s3] sm:$0xff] }
   0x4   :  { %52 = vmatpush.msra.mxu0 %v27_v1  ;;  %v137_v5 = vld [vmem:[%s212_s2] ss:$0 sm:$0xff] }
   0x5   :  { %132 = vmatmul.msk.f32.vlgmr.msra.gmra.mxu0 %vm33_vm0, %v26_v2  ;;  %87 = vmatpush.msra.mxu1 %v58_v4  ;;  %v93_v9 = vld [vmem:[%s216_s5] sm:$0x3f] }
   0x6   :  { %135 = vmatpush.msk.msra.mxu2 %vm102_vm3, %v93_v9  ;;  %v138_v10 = vld [vmem:[%s213_s4] ss:$0 sm:$0xff] }
   0x7   :  { %v139_v14 = vld [vmem:[%s215_s6] ss:$0 sm:$0xff] }
  0x82   :  { %v54_v6 = vpop.f32.mrf.mxu0 }
  0x83   :  { %v55_v7 = vadd.f32 %v137_v5, %v54_v6 }
  0x85   :  { %v57_v8 = vmax.f32 %v55_v7, 0.0 }
  0x87   :  { %134 = vmatmul.msk.f32.vlgmr.msra.gmra.mxu1 %vm64_vm2, %v57_v8 }
 0x104   :  { %v89_v11 = vpop.f32.mrf.mxu1 }
 0x105   :  { %v90_v12 = vadd.f32 %v138_v10, %v89_v11 }
 0x107   :  { %v92_v13 = vmax.f32 %v90_v12, 0.0 }
 0x109   :  { %136 = vmatmul.msk.f32.vlgmr.msra.gmra.mxu2 %vm98_vm4, %v92_v13 }
 0x18c   :  { %v123_v15 = vpop.f32.mrf.mxu2 }
 0x18d   :  { %v124_v16 = vadd.f32 %v139_v14, %v123_v15 }
 0x18f   :  { %127 = vst.msk [vmem:[%s217_s7] sm:$0xff] %vm126_vm5, %v124_v16 }

</bundles_post_ra>
